<compile_context>
chip_gen: v7x
topology: tpu7x:2x2x1
jax: 0.10.0
libtpu: 0.0.40
codegen_flags: <defaults>
</compile_context>

<pallas_src>
import jax
import jax.numpy as jnp
from jax.experimental import pallas as pl
from jax.experimental.pallas import tpu as pltpu

# ---------------- model hyper-parameters (consistent with the module) -------
NUM_FOURIER_FEATURES = 4
LAYER_SIZE = 32
NUMBER_OF_LAYERS = 2
IN_DIM = 3 + 6 * NUM_FOURIER_FEATURES     # 27
IN_DIM_PAD = 32                            # 8-aligned K for the first matmul
OUT_DIM = 4                                # rgb(3) + radiance(1)

N_POINTS = 256                             # demo batch of sample points
TILE_N = 128                               # 2 grid tiles -> both v7x TCs busy
                                           # (sweep 512/1024/2048 for real batches)


# ---------------- Pallas kernel ---------------------------------------------
def nerf_kernel(x_ref, w1_ref, b1_ref, ws_ref, bs_ref, wh_ref, bh_ref, o_ref):
    # layer1 + relu : bf16 operands, f32 accumulate, f32 elementwise
    h = jnp.dot(x_ref[...], w1_ref[...], preferred_element_type=jnp.float32)
    h = jnp.maximum(h + b1_ref[...], 0.0)

    # hidden layers + relu (static trip count -> unrolled Python loop)
    for l in range(NUMBER_OF_LAYERS):
        h = jnp.dot(h.astype(jnp.bfloat16), ws_ref[l],
                    preferred_element_type=jnp.float32)
        h = jnp.maximum(h + bs_ref[l], 0.0)

    # fused head: single (LAYER_SIZE, 4) matmul; sigmoid cols 0..2, relu col 3
    out = jnp.dot(h.astype(jnp.bfloat16), wh_ref[...],
                  preferred_element_type=jnp.float32) + bh_ref[...]
    col = jax.lax.broadcasted_iota(jnp.int32, out.shape, dimension=1)
    o_ref[...] = jnp.where(col < 3, jax.nn.sigmoid(out), jnp.maximum(out, 0.0))


# ---------------- wrapper ----------------------------------------------------
def nerf_forward(x, params, tile_n=TILE_N):
    (w1, b1, ws, bs, wh, bh) = params
    n = x.shape[0]
    n_pad = pl.cdiv(n, tile_n) * tile_n

    # pad rows to a tile multiple and features 27 -> 32; cast to bf16 operands
    xp = jnp.zeros((n_pad, IN_DIM_PAD), jnp.bfloat16)
    xp = xp.at[:n, :IN_DIM].set(x.astype(jnp.bfloat16))

    full = lambda shape: pl.BlockSpec(shape, lambda i: tuple(0 for _ in shape))

    flops = 2 * n_pad * (IN_DIM_PAD * LAYER_SIZE
                         + NUMBER_OF_LAYERS * LAYER_SIZE * LAYER_SIZE
                         + LAYER_SIZE * OUT_DIM)
    weight_bytes = sum(int(a.size) * a.dtype.itemsize
                       for a in (w1, b1, ws, bs, wh, bh))
    cost = pl.CostEstimate(
        flops=flops,
        transcendentals=3 * n_pad,                       # sigmoid exp, 3 rgb cols
        bytes_accessed=int(xp.size) * 2 + n_pad * OUT_DIM * 4 + weight_bytes)

    out = pl.pallas_call(
        nerf_kernel,
        out_shape=jax.ShapeDtypeStruct((n_pad, OUT_DIM), jnp.float32),
        grid_spec=pltpu.PrefetchScalarGridSpec(
            num_scalar_prefetch=0,
            grid=(n_pad // tile_n,),
            in_specs=[
                pl.BlockSpec((tile_n, IN_DIM_PAD), lambda i: (i, 0)),   # x
                full((IN_DIM_PAD, LAYER_SIZE)),                         # w1
                full((1, LAYER_SIZE)),                                  # b1
                full((NUMBER_OF_LAYERS, LAYER_SIZE, LAYER_SIZE)),       # ws
                full((NUMBER_OF_LAYERS, 1, LAYER_SIZE)),                # bs
                full((LAYER_SIZE, OUT_DIM)),                            # w_head
                full((1, OUT_DIM)),                                     # b_head
            ],
            out_specs=pl.BlockSpec((tile_n, OUT_DIM), lambda i: (i, 0)),
        ),
        compiler_params=pltpu.CompilerParams(
            dimension_semantics=("parallel",)),
        cost_estimate=cost,
    )(xp, w1, b1, ws, bs, wh, bh)

    return out[:n]


# ---------------- deterministic parameter init (Xavier uniform, zero bias) --
def xavier_uniform(key, fan_in, fan_out):
    bound = (6.0 / (fan_in + fan_out)) ** 0.5
    # stored directly as (in, out) = W.T of the PyTorch (out, in) layout
    return jax.random.uniform(key, (fan_in, fan_out), jnp.float32, -bound, bound)


def init_params(key):
    keys = jax.random.split(key, 3 + NUMBER_OF_LAYERS)
    w1 = xavier_uniform(keys[0], IN_DIM, LAYER_SIZE)
    # zero-pad K axis 27 -> 32; padded x columns are zero so results unchanged
    w1p = jnp.zeros((IN_DIM_PAD, LAYER_SIZE), jnp.float32).at[:IN_DIM].set(w1)
    b1 = jnp.zeros((1, LAYER_SIZE), jnp.float32)
    ws = jnp.stack([xavier_uniform(keys[1 + l], LAYER_SIZE, LAYER_SIZE)
                    for l in range(NUMBER_OF_LAYERS)])
    bs = jnp.zeros((NUMBER_OF_LAYERS, 1, LAYER_SIZE), jnp.float32)
    wrgb = xavier_uniform(keys[1 + NUMBER_OF_LAYERS], LAYER_SIZE, 3)
    wrad = xavier_uniform(keys[2 + NUMBER_OF_LAYERS], LAYER_SIZE, 1)
    wh = jnp.concatenate([wrgb, wrad], axis=1)       # fused (32, 4) head weight
    bh = jnp.zeros((1, OUT_DIM), jnp.float32)        # fused (1, 4) head bias
    # matmul operands in bf16 (halves HBM traffic, native MXU path);
    # biases stay f32 for the VPU/EUP elementwise path.
    return (w1p.astype(jnp.bfloat16), b1,
            ws.astype(jnp.bfloat16), bs,
            wh.astype(jnp.bfloat16), bh)


# ---------------- pure-JAX reference (same bf16 matmul / f32 accum recipe) --
def nerf_reference(x, params):
    (w1, b1, ws, bs, wh, bh) = params
    xp = jnp.zeros((x.shape[0], IN_DIM_PAD), jnp.bfloat16)
    xp = xp.at[:, :IN_DIM].set(x.astype(jnp.bfloat16))
    h = jnp.maximum(jnp.dot(xp, w1, preferred_element_type=jnp.float32) + b1, 0.0)
    for l in range(NUMBER_OF_LAYERS):
        h = jnp.maximum(
            jnp.dot(h.astype(jnp.bfloat16), ws[l],
                    preferred_element_type=jnp.float32) + bs[l], 0.0)
    out = jnp.dot(h.astype(jnp.bfloat16), wh,
                  preferred_element_type=jnp.float32) + bh
    rgb = jax.nn.sigmoid(out[:, :3])
    rad = jnp.maximum(out[:, 3:], 0.0)
    return jnp.concatenate([rgb, rad], axis=-1)


if __name__ == "__main__":
    key = jax.random.PRNGKey(0)
    k_x, k_p = jax.random.split(key)

    x = jax.random.normal(k_x, (N_POINTS, IN_DIM), jnp.float32)
    params = init_params(k_p)

    out = nerf_forward(x, params)
    out = jax.block_until_ready(out)

    ref = nerf_reference(x, params)
    assert out.shape == (N_POINTS, 4)
    assert jnp.allclose(out, ref, atol=1e-3, rtol=1e-3), "mismatch vs reference"

    print("KERNEL_OK")
</pallas_src>

<mosaic_0001>
module attributes {stable_mosaic.version = 11 : i64} {
  func.func @nerf_kernel(%arg0: i32, %arg1: memref<128x32xbf16, #tpu.memory_space<vmem>>, %arg2: memref<32x32xbf16, #tpu.memory_space<vmem>>, %arg3: memref<1x32xf32, #tpu.memory_space<vmem>>, %arg4: memref<2x32x32xbf16, #tpu.memory_space<vmem>>, %arg5: memref<2x1x32xf32, #tpu.memory_space<vmem>>, %arg6: memref<32x4xbf16, #tpu.memory_space<vmem>>, %arg7: memref<1x4xf32, #tpu.memory_space<vmem>>, %arg8: memref<128x4xf32, #tpu.memory_space<vmem>>) attributes {dimension_semantics = [#tpu.dimension_semantics<parallel>], iteration_bounds = array<i64: 2>, scalar_prefetch = 0 : i64, scratch_operands = 0 : i64, tpu.core_type = #tpu.core_type<tc>, window_params = [{transform_indices = @transform_0, window_bounds = array<i64: 128, 32>}, {pipeline_mode = #tpu.pipeline_mode<synchronous>, transform_indices = @transform_1, window_bounds = array<i64: 32, 32>}, {pipeline_mode = #tpu.pipeline_mode<synchronous>, transform_indices = @transform_2, window_bounds = array<i64: 1, 32>}, {pipeline_mode = #tpu.pipeline_mode<synchronous>, transform_indices = @transform_3, window_bounds = array<i64: 2, 32, 32>}, {pipeline_mode = #tpu.pipeline_mode<synchronous>, transform_indices = @transform_4, window_bounds = array<i64: 2, 1, 32>}, {pipeline_mode = #tpu.pipeline_mode<synchronous>, transform_indices = @transform_5, window_bounds = array<i64: 32, 4>}, {pipeline_mode = #tpu.pipeline_mode<synchronous>, transform_indices = @transform_6, window_bounds = array<i64: 1, 4>}, {transform_indices = @transform_7, window_bounds = array<i64: 128, 4>}]} {
    %c0 = arith.constant 0 : index
    %c0_0 = arith.constant 0 : index
    %0 = vector.load %arg1[%c0, %c0_0] : memref<128x32xbf16, #tpu.memory_space<vmem>>, vector<128x32xbf16>
    %c0_1 = arith.constant 0 : index
    %c0_2 = arith.constant 0 : index
    %1 = vector.load %arg2[%c0_1, %c0_2] : memref<32x32xbf16, #tpu.memory_space<vmem>>, vector<32x32xbf16>
    %cst = arith.constant dense<0.000000e+00> : vector<128x32xf32>
    %2 = tpu.matmul %0, %1, %cst {dimension_numbers = #tpu.dot_dimension_numbers<[1], [0], [0], [1], [0, 0, 1, 1], [], []>} : vector<128x32xbf16>, vector<32x32xbf16>, vector<128x32xf32> -> vector<128x32xf32>
    %c0_3 = arith.constant 0 : index
    %c0_4 = arith.constant 0 : index
    %3 = vector.load %arg3[%c0_3, %c0_4] : memref<1x32xf32, #tpu.memory_space<vmem>>, vector<1x32xf32>
    %4 = vector.broadcast %3 : vector<1x32xf32> to vector<128x32xf32>
    %5 = arith.addf %2, %4 : vector<128x32xf32>
    %cst_5 = arith.constant 0.000000e+00 : f32
    %6 = vector.broadcast %cst_5 : f32 to vector<128x32xf32>
    %7 = arith.maximumf %5, %6 : vector<128x32xf32>
    %8 = arith.truncf %7 : vector<128x32xf32> to vector<128x32xbf16>
    %c0_6 = arith.constant 0 : index
    %c0_7 = arith.constant 0 : index
    %c0_8 = arith.constant 0 : index
    %9 = vector.load %arg4[%c0_6, %c0_7, %c0_8] : memref<2x32x32xbf16, #tpu.memory_space<vmem>>, vector<1x32x32xbf16>
    %10 = vector.shape_cast %9 : vector<1x32x32xbf16> to vector<32x32xbf16>
    %cst_9 = arith.constant dense<0.000000e+00> : vector<128x32xf32>
    %11 = tpu.matmul %8, %10, %cst_9 {dimension_numbers = #tpu.dot_dimension_numbers<[1], [0], [0], [1], [0, 0, 1, 1], [], []>} : vector<128x32xbf16>, vector<32x32xbf16>, vector<128x32xf32> -> vector<128x32xf32>
    %c0_10 = arith.constant 0 : index
    %c0_11 = arith.constant 0 : index
    %c0_12 = arith.constant 0 : index
    %12 = vector.load %arg5[%c0_10, %c0_11, %c0_12] : memref<2x1x32xf32, #tpu.memory_space<vmem>>, vector<1x1x32xf32>
    %13 = vector.shape_cast %12 : vector<1x1x32xf32> to vector<1x32xf32>
    %14 = vector.broadcast %13 : vector<1x32xf32> to vector<128x32xf32>
    %15 = arith.addf %11, %14 : vector<128x32xf32>
    %cst_13 = arith.constant 0.000000e+00 : f32
    %16 = vector.broadcast %cst_13 : f32 to vector<128x32xf32>
    %17 = arith.maximumf %15, %16 : vector<128x32xf32>
    %18 = arith.truncf %17 : vector<128x32xf32> to vector<128x32xbf16>
    %c1 = arith.constant 1 : index
    %c0_14 = arith.constant 0 : index
    %c0_15 = arith.constant 0 : index
    %19 = vector.load %arg4[%c1, %c0_14, %c0_15] : memref<2x32x32xbf16, #tpu.memory_space<vmem>>, vector<1x32x32xbf16>
    %20 = vector.shape_cast %19 : vector<1x32x32xbf16> to vector<32x32xbf16>
    %cst_16 = arith.constant dense<0.000000e+00> : vector<128x32xf32>
    %21 = tpu.matmul %18, %20, %cst_16 {dimension_numbers = #tpu.dot_dimension_numbers<[1], [0], [0], [1], [0, 0, 1, 1], [], []>} : vector<128x32xbf16>, vector<32x32xbf16>, vector<128x32xf32> -> vector<128x32xf32>
    %c1_17 = arith.constant 1 : index
    %c0_18 = arith.constant 0 : index
    %c0_19 = arith.constant 0 : index
    %22 = vector.load %arg5[%c1_17, %c0_18, %c0_19] : memref<2x1x32xf32, #tpu.memory_space<vmem>>, vector<1x1x32xf32>
    %23 = vector.shape_cast %22 : vector<1x1x32xf32> to vector<1x32xf32>
    %24 = vector.broadcast %23 : vector<1x32xf32> to vector<128x32xf32>
    %25 = arith.addf %21, %24 : vector<128x32xf32>
    %cst_20 = arith.constant 0.000000e+00 : f32
    %26 = vector.broadcast %cst_20 : f32 to vector<128x32xf32>
    %27 = arith.maximumf %25, %26 : vector<128x32xf32>
    %28 = arith.truncf %27 : vector<128x32xf32> to vector<128x32xbf16>
    %c0_21 = arith.constant 0 : index
    %c0_22 = arith.constant 0 : index
    %29 = vector.load %arg6[%c0_21, %c0_22] : memref<32x4xbf16, #tpu.memory_space<vmem>>, vector<32x4xbf16>
    %cst_23 = arith.constant dense<0.000000e+00> : vector<128x4xf32>
    %30 = tpu.matmul %28, %29, %cst_23 {dimension_numbers = #tpu.dot_dimension_numbers<[1], [0], [0], [1], [0, 0, 1, 1], [], []>} : vector<128x32xbf16>, vector<32x4xbf16>, vector<128x4xf32> -> vector<128x4xf32>
    %c0_24 = arith.constant 0 : index
    %c0_25 = arith.constant 0 : index
    %31 = vector.load %arg7[%c0_24, %c0_25] : memref<1x4xf32, #tpu.memory_space<vmem>>, vector<1x4xf32>
    %32 = vector.broadcast %31 : vector<1x4xf32> to vector<128x4xf32>
    %33 = arith.addf %30, %32 : vector<128x4xf32>
    %34 = tpu.iota {dimensions = array<i32: 1>} : vector<128x4xi32>
    %c3_i32 = arith.constant 3 : i32
    %35 = vector.broadcast %c3_i32 : i32 to vector<128x4xi32>
    %36 = arith.cmpi slt, %34, %35 : vector<128x4xi32>
    %37 = arith.negf %33 : vector<128x4xf32>
    %38 = math.exp %37 : vector<128x4xf32>
    %cst_26 = arith.constant 1.000000e+00 : f32
    %39 = vector.broadcast %cst_26 : f32 to vector<128x4xf32>
    %40 = arith.addf %39, %38 : vector<128x4xf32>
    %41 = arith.divf %39, %40 : vector<128x4xf32>
    %cst_27 = arith.constant 0.000000e+00 : f32
    %42 = vector.broadcast %cst_27 : f32 to vector<128x4xf32>
    %43 = arith.maximumf %33, %42 : vector<128x4xf32>
    %44 = arith.select %36, %41, %43 : vector<128x4xi1>, vector<128x4xf32>
    %c0_28 = arith.constant 0 : index
    %c0_29 = arith.constant 0 : index
    %45 = vector.load %arg8[%c0_28, %c0_29] : memref<128x4xf32, #tpu.memory_space<vmem>>, vector<128x4xf32>
    tpu.vector_store %arg8[%c0_28, %c0_29], %44 {strides = array<i32>} : memref<128x4xf32, #tpu.memory_space<vmem>>, vector<128x4xf32>,
    return
  }
  func.func @transform_0(%arg0: i32) -> (i32, i32) {
    %c0_i32 = arith.constant 0 : i32
    %c0_i32_0 = arith.constant 0 : i32
    return %arg0, %c0_i32 : i32, i32
  }
  func.func @transform_1(%arg0: i32) -> (i32, i32) {
    %c0_i32 = arith.constant 0 : i32
    %c0_i32_0 = arith.constant 0 : i32
    %c0_i32_1 = arith.constant 0 : i32
    return %c0_i32, %c0_i32_0 : i32, i32
  }
  func.func @transform_2(%arg0: i32) -> (i32, i32) {
    %c0_i32 = arith.constant 0 : i32
    %c0_i32_0 = arith.constant 0 : i32
    %c0_i32_1 = arith.constant 0 : i32
    return %c0_i32, %c0_i32_0 : i32, i32
  }
  func.func @transform_3(%arg0: i32) -> (i32, i32, i32) {
    %c0_i32 = arith.constant 0 : i32
    %c0_i32_0 = arith.constant 0 : i32
    %c0_i32_1 = arith.constant 0 : i32
    %c0_i32_2 = arith.constant 0 : i32
    return %c0_i32, %c0_i32_0, %c0_i32_1 : i32, i32, i32
  }
  func.func @transform_4(%arg0: i32) -> (i32, i32, i32) {
    %c0_i32 = arith.constant 0 : i32
    %c0_i32_0 = arith.constant 0 : i32
    %c0_i32_1 = arith.constant 0 : i32
    %c0_i32_2 = arith.constant 0 : i32
    return %c0_i32, %c0_i32_0, %c0_i32_1 : i32, i32, i32
  }
  func.func @transform_5(%arg0: i32) -> (i32, i32) {
    %c0_i32 = arith.constant 0 : i32
    %c0_i32_0 = arith.constant 0 : i32
    %c0_i32_1 = arith.constant 0 : i32
    return %c0_i32, %c0_i32_0 : i32, i32
  }
  func.func @transform_6(%arg0: i32) -> (i32, i32) {
    %c0_i32 = arith.constant 0 : i32
    %c0_i32_0 = arith.constant 0 : i32
    %c0_i32_1 = arith.constant 0 : i32
    return %c0_i32, %c0_i32_0 : i32, i32
  }
  func.func @transform_7(%arg0: i32) -> (i32, i32) {
    %c0_i32 = arith.constant 0 : i32
    %c0_i32_0 = arith.constant 0 : i32
    return %arg0, %c0_i32 : i32, i32
  }
}

</mosaic_0001>

<bundles_post_ra>
// kernel: tpu_custom_call.1
= control target key start
LH: loop header
LB: loop body
LE: loop exit
PB: predicated region body
PF: predicated region fallthrough
CT: control target
= control target key end

     0   :  { %s1534_s24 = smov 0   ;;  %s1774_s0 = inlined_call_operand.vmem [shape: bf16[256,32], index: 0, kind: input, shape index: {}]   ;;  %s1775_s1 = inlined_call_operand.vmem [shape: bf16[32,32], index: 1, kind: input, shape index: {}]   ;;  %s1776_s2 = inlined_call_operand.vmem [shape: f32[1,32], index: 2, kind: input, shape index: {}]   ;;  %s1777_s3 = inlined_call_operand.vmem [shape: bf16[2,32,32], index: 3, kind: input, shape index: {}]   ;;  %s1778_s4 = inlined_call_operand.vmem [shape: f32[2,1,32], index: 4, kind: input, shape index: {}]   ;;  %s1779_s5 = inlined_call_operand.vmem [shape: bf16[32,4], index: 5, kind: input, shape index: {}]   ;;  %s1780_s6 = inlined_call_operand.vmem [shape: f32[1,4], index: 6, kind: input, shape index: {}]   ;;  %s1781_s7 = inlined_call_operand.vmem [shape: f32[256,4], index: 7, kind: output, shape index: {}]  }
   0x1 LB: > { %s1194_s25 = sadd.s32 4294967295, %s1492_s24   ;;  %p1198_p0 = scmp.ge.s32.totalorder %s1492_s24, 1  ;;  %s1492_s24 = sphi %s1534_s24, %s17_s24  }
   0x2   : > { %p238_p1 = scmp.lt.s32.totalorder %s1492_s24, 3 }
   0x4   : > { %p239_p2 = pnand %p1198_p0, %p238_p1 }
   0x5   : > { %v1406_v0 = vld [vmem:[%s1775_s1] sm:$0xff] (!%p239_p2)   ;;  %s1199_s28 = sshll.u32 (!%p239_p2), %s1194_s25, 4  ;;  %v1407_v1 = vld [vmem:[%s1775_s1 + $0x8] sm:$0xff] (!%p239_p2)   ;;  %vm362_vm0 = vcmask (!%p239_p2), 261120   ;;  %v1418_v12 = vld [vmem:[%s1777_s3 + $0x10] sm:$0xff] (!%p239_p2)   ;;  %vm1121_vm2 = vcmask (!%p239_p2), 31744  }
   0x6   : > { %242 = sbr.rel (%p239_p2) target bundleno = 954 (0x3ba), region = 48  ;;  %p271_p3 = scmp.lt.s32.totalorder (!%p239_p2), %s1199_s28, 31  ;;  %1318 = vmatprep.subr.bf16.mxu0 (!%p239_p2), %v1406_v0  ;;  %v1416_v10 = vld [vmem:[%s1777_s3] sm:$0xff] (!%p239_p2)   ;;  %v1417_v11 = vld [vmem:[%s1777_s3 + $0x8] sm:$0xff] (!%p239_p2)   ;;  %v1419_v13 = vld [vmem:[%s1777_s3 + $0x18] sm:$0xff] (!%p239_p2)  }
   0x7   : > { %1319 = vmatpush3.bf16.msra.mxu0 (!%p239_p2), %v1406_v0  ;;  %1338 = vmatprep.subr.bf16.mxu1 (!%p239_p2), %v1416_v10  ;;  %v1203_v14 = vld [vmem:[%s1776_s2] ss:$0 sm:$0xff] (!%p239_p2) }
   0x8   : > { %1320 = vmatprep.subr.bf16.mxu0 (!%p239_p2), %v1407_v1  ;;  %1339 = vmatpush3.bf16.msra.mxu1 (!%p239_p2), %v1416_v10 }
   0x9   : > { %1340 = vmatprep.subr.bf16.mxu1 (!%p239_p2), %v1417_v11 }
   0xb   : > { %1321 = vmatpush3.bf16.msra.mxu0 (!%p239_p2), %v1407_v1 }
   0xc   : > { %1341 = vmatpush3.bf16.msra.mxu1 (!%p239_p2), %v1417_v11  ;;  %1358 = vmatprep.subr.bf16.mxu0 (!%p239_p2), %v1418_v12 }
   0xd   : > { %s1783_s28 = smov (!%p271_p3, %s1199_s28), 31 }
   0xe   : > { %s1200_s8 = sshll.u32 %s1783_s28, 2 }
   0xf   : > { %s274_s11 = scalar_lea.vmem %s1774_s0, %s1200_s8 }
  0x10   : > { %v1408_v2 = vld [vmem:[%s274_s11] sm:$0xff]   ;;  %v1409_v3 = vld [vmem:[%s274_s11 + $0x8] sm:$0xff]   ;;  %v1410_v4 = vld [vmem:[%s274_s11 + $0x10] sm:$0xff]  }
  0x11   : > { %1322 = vmatprep.mubr.msk.bf16.mxu0 %vm362_vm0, %v1408_v2  ;;  %v1411_v5 = vld [vmem:[%s274_s11 + $0x18] sm:$0xff]   ;;  %v1412_v6 = vld [vmem:[%s274_s11 + $0x20] sm:$0xff]   ;;  %v1413_v7 = vld [vmem:[%s274_s11 + $0x28] sm:$0xff]  }
  0x12   : > { %1323 = vmatmul.mubr.msk.bf16.vlgmr.msra.gmra.mrb[0].mxu0 %vm362_vm0, %v1409_v3  ;;  %v1414_v8 = vld [vmem:[%s274_s11 + $0x30] sm:$0xff]   ;;  %v1415_v9 = vld [vmem:[%s274_s11 + $0x38] sm:$0xff]   ;;  %s1202_s11 = sshll.u32 %s1783_s28, 3 }
  0x13   : > { %1326 = vmatprep.mubr.msk.bf16.mxu0 %vm362_vm0, %v1410_v4  ;;  %1359 = vmatpush3.bf16.msra.mxu0 %v1418_v12  ;;  %s1679_s13 = scalar_lea.vmem %s1781_s7, %s1202_s11 }
  0x14   : > { %1360 = vmatprep.subr.bf16.mxu0 %v1419_v13 }
  0x17   : > { %1361 = vmatpush3.bf16.msra.mxu0 %v1419_v13 }
  0x1a   : > { %1327 = vmatmul.mubr.msk.bf16.gmra.mrb[4].mxu0 %vm362_vm0, %v1411_v5 }
  0x1b   : > { %1330 = vmatprep.mubr.msk.bf16.mxu0 %vm362_vm0, %v1412_v6 }
  0x22   : > { %1331 = vmatmul.mubr.msk.bf16.gmra.mrb[8].mxu0 %vm362_vm0, %v1413_v7  ;;  %v1420_v7 = vld [vmem:[%s1779_s5] sm:$0xff]  }
  0x23   : > { %1334 = vmatprep.mubr.msk.bf16.mxu0 %vm362_vm0, %v1414_v8  ;;  %v1421_v8 = vld [vmem:[%s1779_s5 + $0x8] sm:$0xff]   ;;  %1378 = vmatprep.subr.bf16.mxu1 %v1420_v7 }
  0x2a   : > { %1335 = vmatmul.mubr.msk.bf16.gmra.mrb[12].mxu0 %vm362_vm0, %v1415_v9  ;;  %v1222_v9 = vld [vmem:[%s1778_s4] ss:$0 sm:$0xff] }
  0xe5   : > { %v1324_v15 = vpop.f32.mrb[0].mxu0 }
  0xe6   : > { %v430_v16 = vadd.f32 %v1324_v15, %v1203_v14  ;;  %v421_v17 = vpop.f32.mrb[1].mxu0 }
  0xe7   : > { %v422_v18 = vadd.f32 %v1203_v14, %v421_v17  ;;  %v1325_v19 = vpop.f32.mrb[2].mxu0 }
  0xe8   : > { %v433_v20 = vadd.f32 %v1325_v19, %v1203_v14  ;;  %v424_v21 = vpop.f32.mrb[3].mxu0  ;;  %v486_v23 = vmax.f32 %v430_v16, 0.0 }
  0xe9   : > { %v425_v22 = vadd.f32 %v1203_v14, %v424_v21  ;;  %v484_v25 = vmax.f32 %v422_v18, 0.0 }
  0xea   : > { %v487_v24 = vmax.f32 %v433_v20, 0.0 }
  0xeb   : > { %v485_v26 = vmax.f32 %v425_v22, 0.0 }
  0xec   : > { %v501_v27 = vpack.c.bf16 %v487_v24, %v486_v23 }
  0xed   : > { %v1328_v28 = vpop.f32.mrb[4].mxu0  ;;  %v500_v29 = vpack.c.bf16 %v485_v26, %v484_v25 }
  0xee   : > { %v446_v30 = vadd.f32 %v1328_v28, %v1203_v14  ;;  %v437_v31 = vpop.f32.mrb[5].mxu0 }
  0xef   : > { %v438_v32 = vadd.f32 %v1203_v14, %v437_v31  ;;  %v1329_v33 = vpop.f32.mrb[6].mxu0  ;;  %1342 = vmatprep.mubr.msk.bf16.mxu1 %vm362_vm0, %v500_v29 }
  0xf0   : > { %v449_v34 = vadd.f32 %v1329_v33, %v1203_v14  ;;  %v440_v35 = vpop.f32.mrb[7].mxu0  ;;  %1343 = vmatmul.mubr.msk.bf16.vlgmr.msra.gmra.mrb[0].mxu1 %vm362_vm0, %v501_v27  ;;  %v490_v37 = vmax.f32 %v446_v30, 0.0 }
  0xf1   : > { %v441_v36 = vadd.f32 %v1203_v14, %v440_v35  ;;  %v488_v39 = vmax.f32 %v438_v32, 0.0  ;;  %1379 = vmatpush3.bf16.msra.mxu1 %v1420_v7 }
  0xf2   : > { %v491_v38 = vmax.f32 %v449_v34, 0.0  ;;  %1380 = vmatprep.subr.bf16.mxu1 %v1421_v8 }
  0xf3   : > { %v489_v40 = vmax.f32 %v441_v36, 0.0 }
  0xf4   : > { %v503_v41 = vpack.c.bf16 %v491_v38, %v490_v37 }
  0xf5   : > { %v502_v42 = vpack.c.bf16 %v489_v40, %v488_v39  ;;  %v1332_v43 = vpop.f32.mrb[8].mxu0  ;;  %1381 = vmatpush3.bf16.msra.mxu1 %v1421_v8 }
  0xf6   : > { %v462_v44 = vadd.f32 %v1332_v43, %v1203_v14  ;;  %v453_v45 = vpop.f32.mrb[9].mxu0 }
  0xf7   : > { %v454_v46 = vadd.f32 %v1203_v14, %v453_v45  ;;  %v1333_v47 = vpop.f32.mrb[10].mxu0  ;;  %1346 = vmatprep.mubr.msk.bf16.mxu1 %vm362_vm0, %v502_v42 }
  0xf8   : > { %v465_v48 = vadd.f32 %v1333_v47, %v1203_v14  ;;  %v456_v49 = vpop.f32.mrb[11].mxu0  ;;  %1347 = vmatmul.mubr.msk.bf16.gmra.mrb[4].mxu1 %vm362_vm0, %v503_v41  ;;  %v494_v51 = vmax.f32 %v462_v44, 0.0 }
  0xf9   : > { %v457_v50 = vadd.f32 %v1203_v14, %v456_v49  ;;  %v492_v53 = vmax.f32 %v454_v46, 0.0 }
  0xfa   : > { %v495_v52 = vmax.f32 %v465_v48, 0.0 }
  0xfb   : > { %v493_v54 = vmax.f32 %v457_v50, 0.0 }
  0xfc   : > { %v505_v55 = vpack.c.bf16 %v495_v52, %v494_v51 }
  0xfd   : > { %v504_v56 = vpack.c.bf16 %v493_v54, %v492_v53  ;;  %v1336_v57 = vpop.f32.mrb[12].mxu0 }
  0xfe   : > { %v478_v58 = vadd.f32 %v1336_v57, %v1203_v14  ;;  %v469_v59 = vpop.f32.mrb[13].mxu0 }
  0xff   : > { %v470_v60 = vadd.f32 %v1203_v14, %v469_v59  ;;  %v1337_v61 = vpop.f32.mrb[14].mxu0  ;;  %1350 = vmatprep.mubr.msk.bf16.mxu1 %vm362_vm0, %v504_v56 }
 0x100   : > { %v481_v62 = vadd.f32 %v1337_v61, %v1203_v14  ;;  %v472_v63 = vpop.f32.mrb[15].mxu0  ;;  %1351 = vmatmul.mubr.msk.bf16.gmra.mrb[8].mxu1 %vm362_vm0, %v505_v55  ;;  %v498_v1 = vmax.f32 %v478_v58, 0.0 }
 0x101   : > { %v473_v0 = vadd.f32 %v1203_v14, %v472_v63  ;;  %v496_v3 = vmax.f32 %v470_v60, 0.0 }
 0x102   : > { %v499_v2 = vmax.f32 %v481_v62, 0.0 }
 0x103   : > { %v497_v4 = vmax.f32 %v473_v0, 0.0 }
 0x104   : > { %v507_v5 = vpack.c.bf16 %v499_v2, %v498_v1  ;;  %v1238_v2 = vld [vmem:[%s1778_s4 + $0x1] ss:$0 sm:$0xff] }
 0x105   : > { %v506_v6 = vpack.c.bf16 %v497_v4, %v496_v3 }
 0x107   : > { %1354 = vmatprep.mubr.msk.bf16.mxu1 %vm362_vm0, %v506_v6 }
 0x108   : > { %1355 = vmatmul.mubr.msk.bf16.gmra.mrb[12].mxu1 %vm362_vm0, %v507_v5 }
 0x1c3   : > { %v1344_v10 = vpop.f32.mrb[0].mxu1 }
 0x1c4   : > { %v598_v11 = vadd.f32 %v1344_v10, %v1222_v9  ;;  %v589_v12 = vpop.f32.mrb[1].mxu1 }
 0x1c5   : > { %v590_v13 = vadd.f32 %v1222_v9, %v589_v12  ;;  %v1345_v14 = vpop.f32.mrb[2].mxu1 }
 0x1c6   : > { %v601_v15 = vadd.f32 %v1345_v14, %v1222_v9  ;;  %v592_v16 = vpop.f32.mrb[3].mxu1  ;;  %v654_v18 = vmax.f32 %v598_v11, 0.0 }
 0x1c7   : > { %v593_v17 = vadd.f32 %v1222_v9, %v592_v16  ;;  %v652_v20 = vmax.f32 %v590_v13, 0.0 }
 0x1c8   : > { %v655_v19 = vmax.f32 %v601_v15, 0.0 }
 0x1c9   : > { %v653_v21 = vmax.f32 %v593_v17, 0.0 }
 0x1ca   : > { %v669_v22 = vpack.c.bf16 %v655_v19, %v654_v18 }
 0x1cb   : > { %v668_v23 = vpack.c.bf16 %v653_v21, %v652_v20  ;;  %v1348_v24 = vpop.f32.mrb[4].mxu1 }
 0x1cc   : > { %v614_v25 = vadd.f32 %v1348_v24, %v1222_v9  ;;  %v605_v26 = vpop.f32.mrb[5].mxu1 }
 0x1cd   : > { %v606_v27 = vadd.f32 %v1222_v9, %v605_v26  ;;  %v1349_v28 = vpop.f32.mrb[6].mxu1  ;;  %1362 = vmatprep.mubr.msk.bf16.mxu0 %vm362_vm0, %v668_v23 }
 0x1ce   : > { %v617_v29 = vadd.f32 %v1349_v28, %v1222_v9  ;;  %v608_v30 = vpop.f32.mrb[7].mxu1  ;;  %1363 = vmatmul.mubr.msk.bf16.vlgmr.msra.gmra.mrb[16].mxu0 %vm362_vm0, %v669_v22  ;;  %v658_v32 = vmax.f32 %v614_v25, 0.0 }
 0x1cf   : > { %v609_v31 = vadd.f32 %v1222_v9, %v608_v30  ;;  %v656_v34 = vmax.f32 %v606_v27, 0.0 }
 0x1d0   : > { %v659_v33 = vmax.f32 %v617_v29, 0.0 }
 0x1d1   : > { %v657_v35 = vmax.f32 %v609_v31, 0.0 }
 0x1d2   : > { %v671_v36 = vpack.c.bf16 %v659_v33, %v658_v32 }
 0x1d3   : > { %v670_v37 = vpack.c.bf16 %v657_v35, %v656_v34  ;;  %v1352_v38 = vpop.f32.mrb[8].mxu1 }
 0x1d4   : > { %v630_v39 = vadd.f32 %v1352_v38, %v1222_v9  ;;  %v621_v40 = vpop.f32.mrb[9].mxu1 }
 0x1d5   : > { %v622_v41 = vadd.f32 %v1222_v9, %v621_v40  ;;  %v1353_v42 = vpop.f32.mrb[10].mxu1  ;;  %1366 = vmatprep.mubr.msk.bf16.mxu0 %vm362_vm0, %v670_v37 }
 0x1d6   : > { %v633_v43 = vadd.f32 %v1353_v42, %v1222_v9  ;;  %v624_v44 = vpop.f32.mrb[11].mxu1  ;;  %1367 = vmatmul.mubr.msk.bf16.gmra.mrb[20].mxu0 %vm362_vm0, %v671_v36  ;;  %v662_v46 = vmax.f32 %v630_v39, 0.0 }
 0x1d7   : > { %v625_v45 = vadd.f32 %v1222_v9, %v624_v44  ;;  %v660_v48 = vmax.f32 %v622_v41, 0.0 }
 0x1d8   : > { %v663_v47 = vmax.f32 %v633_v43, 0.0 }
 0x1d9   : > { %v661_v49 = vmax.f32 %v625_v45, 0.0 }
 0x1da   : > { %v673_v50 = vpack.c.bf16 %v663_v47, %v662_v46 }
 0x1db   : > { %v672_v51 = vpack.c.bf16 %v661_v49, %v660_v48  ;;  %v1356_v52 = vpop.f32.mrb[12].mxu1 }
 0x1dc   : > { %v646_v53 = vadd.f32 %v1356_v52, %v1222_v9  ;;  %v637_v54 = vpop.f32.mrb[13].mxu1 }
 0x1dd   : > { %v638_v55 = vadd.f32 %v1222_v9, %v637_v54  ;;  %v1357_v56 = vpop.f32.mrb[14].mxu1  ;;  %1370 = vmatprep.mubr.msk.bf16.mxu0 %vm362_vm0, %v672_v51 }
 0x1de   : > { %v649_v57 = vadd.f32 %v1357_v56, %v1222_v9  ;;  %v640_v58 = vpop.f32.mrb[15].mxu1  ;;  %1371 = vmatmul.mubr.msk.bf16.gmra.mrb[24].mxu0 %vm362_vm0, %v673_v50  ;;  %v666_v60 = vmax.f32 %v646_v53, 0.0 }
 0x1df   : > { %v641_v59 = vadd.f32 %v1222_v9, %v640_v58  ;;  %v664_v62 = vmax.f32 %v638_v55, 0.0 }
 0x1e0   : > { %v667_v61 = vmax.f32 %v649_v57, 0.0 }
 0x1e1   : > { %v665_v63 = vmax.f32 %v641_v59, 0.0  ;;  %v1616_v59 = vld [vmem:[%s1780_s6] ss:$0 sm:$0xff] }
 0x1e2   : > { %v675_v0 = vpack.c.bf16 %v667_v61, %v666_v60 }
 0x1e3   : > { %v674_v1 = vpack.c.bf16 %v665_v63, %v664_v62 }
 0x1e5   : > { %1374 = vmatprep.mubr.msk.bf16.mxu0 %vm362_vm0, %v674_v1 }
 0x1e6   : > { %1375 = vmatmul.mubr.msk.bf16.gmra.mrb[28].mxu0 %vm362_vm0, %v675_v0 }
 0x2a1   : > { %v1364_v3 = vpop.f32.mrb[16].mxu0 }
 0x2a2   : > { %v768_v4 = vadd.f32 %v1364_v3, %v1238_v2  ;;  %v759_v5 = vpop.f32.mrb[17].mxu0 }
 0x2a3   : > { %v760_v6 = vadd.f32 %v1238_v2, %v759_v5  ;;  %v1365_v7 = vpop.f32.mrb[18].mxu0 }
 0x2a4   : > { %v771_v8 = vadd.f32 %v1365_v7, %v1238_v2  ;;  %v762_v9 = vpop.f32.mrb[19].mxu0  ;;  %v824_v11 = vmax.f32 %v768_v4, 0.0 }
 0x2a5   : > { %v763_v10 = vadd.f32 %v1238_v2, %v762_v9  ;;  %v822_v13 = vmax.f32 %v760_v6, 0.0 }
 0x2a6   : > { %v825_v12 = vmax.f32 %v771_v8, 0.0 }
 0x2a7   : > { %v823_v14 = vmax.f32 %v763_v10, 0.0 }
 0x2a8   : > { %v839_v15 = vpack.c.bf16 %v825_v12, %v824_v11 }
 0x2a9   : > { %v838_v16 = vpack.c.bf16 %v823_v14, %v822_v13  ;;  %v1368_v17 = vpop.f32.mrb[20].mxu0 }
 0x2aa   : > { %v784_v18 = vadd.f32 %v1368_v17, %v1238_v2  ;;  %v775_v19 = vpop.f32.mrb[21].mxu0 }
 0x2ab   : > { %v776_v20 = vadd.f32 %v1238_v2, %v775_v19  ;;  %v1369_v21 = vpop.f32.mrb[22].mxu0  ;;  %1382 = vmatprep.mubr.msk.bf16.mxu1 %vm362_vm0, %v838_v16 }
 0x2ac   : > { %v787_v22 = vadd.f32 %v1369_v21, %v1238_v2  ;;  %v778_v23 = vpop.f32.mrb[23].mxu0  ;;  %1383 = vmatmul.mubr.msk.bf16.vlgmr.msra.gmra.mrb[16].mxu1 %vm362_vm0, %v839_v15  ;;  %v828_v25 = vmax.f32 %v784_v18, 0.0 }
 0x2ad   : > { %v779_v24 = vadd.f32 %v1238_v2, %v778_v23  ;;  %v826_v27 = vmax.f32 %v776_v20, 0.0 }
 0x2ae   : > { %v829_v26 = vmax.f32 %v787_v22, 0.0 }
 0x2af   : > { %v827_v28 = vmax.f32 %v779_v24, 0.0 }
 0x2b0   : > { %v841_v29 = vpack.c.bf16 %v829_v26, %v828_v25  ;;  %v990_v25 = vlaneseq }
 0x2b1   : > { %v840_v30 = vpack.c.bf16 %v827_v28, %v826_v27  ;;  %v1372_v31 = vpop.f32.mrb[24].mxu0 }
 0x2b2   : > { %v800_v32 = vadd.f32 %v1372_v31, %v1238_v2  ;;  %v791_v33 = vpop.f32.mrb[25].mxu0 }
 0x2b3   : > { %v792_v34 = vadd.f32 %v1238_v2, %v791_v33  ;;  %v1373_v35 = vpop.f32.mrb[26].mxu0  ;;  %1386 = vmatprep.mubr.msk.bf16.mxu1 %vm362_vm0, %v840_v30 }
 0x2b4   : > { %v803_v36 = vadd.f32 %v1373_v35, %v1238_v2  ;;  %v794_v37 = vpop.f32.mrb[27].mxu0  ;;  %1387 = vmatmul.mubr.msk.bf16.gmra.mrb[20].mxu1 %vm362_vm0, %v841_v29  ;;  %v832_v39 = vmax.f32 %v800_v32, 0.0 }
 0x2b5   : > { %v795_v38 = vadd.f32 %v1238_v2, %v794_v37  ;;  %v830_v41 = vmax.f32 %v792_v34, 0.0 }
 0x2b6   : > { %v833_v40 = vmax.f32 %v803_v36, 0.0 }
 0x2b7   : > { %v831_v42 = vmax.f32 %v795_v38, 0.0  ;;  %v1661_v38 = vand.u32 127, %v990_v25 }
 0x2b8   : > { %v843_v43 = vpack.c.bf16 %v833_v40, %v832_v39 }
 0x2b9   : > { %v842_v44 = vpack.c.bf16 %v831_v42, %v830_v41  ;;  %v1376_v45 = vpop.f32.mrb[28].mxu0  ;;  %vm992_vm1 = vcmp.lt.s32.totalorder %v1661_v38, 3 }
 0x2ba   : > { %v816_v46 = vadd.f32 %v1376_v45, %v1238_v2  ;;  %v807_v47 = vpop.f32.mrb[29].mxu0 }
 0x2bb   : > { %v808_v48 = vadd.f32 %v1238_v2, %v807_v47  ;;  %v1377_v49 = vpop.f32.mrb[30].mxu0  ;;  %1390 = vmatprep.mubr.msk.bf16.mxu1 %vm362_vm0, %v842_v44 }
 0x2bc   : > { %v819_v50 = vadd.f32 %v1377_v49, %v1238_v2  ;;  %v810_v51 = vpop.f32.mrb[31].mxu0  ;;  %1391 = vmatmul.mubr.msk.bf16.gmra.mrb[24].mxu1 %vm362_vm0, %v843_v43  ;;  %v836_v53 = vmax.f32 %v816_v46, 0.0 }
 0x2bd   : > { %v811_v52 = vadd.f32 %v1238_v2, %v810_v51  ;;  %v834_v55 = vmax.f32 %v808_v48, 0.0 }
 0x2be   : > { %v837_v54 = vmax.f32 %v819_v50, 0.0 }
 0x2bf   : > { %v835_v56 = vmax.f32 %v811_v52, 0.0 }
 0x2c0   : > { %v845_v57 = vpack.c.bf16 %v837_v54, %v836_v53 }
 0x2c1   : > { %v844_v58 = vpack.c.bf16 %v835_v56, %v834_v55 }
 0x2c3   : > { %1394 = vmatprep.mubr.msk.bf16.mxu1 %vm362_vm0, %v844_v58 }
 0x2c4   : > { %1395 = vmatmul.mubr.msk.bf16.gmra.mrb[28].mxu1 %vm362_vm0, %v845_v57 }
 0x37f   : > { %v1384_v60 = vpop.f32.mrb[16].mxu1 }
 0x380   : > { %v1619_v61 = vadd.f32 %v1384_v60, %v1616_v59  ;;  %v927_v62 = vpop.f32.mrb[17].mxu1 }
 0x381   : > { %v1622_v63 = vadd.f32 %v1616_v59, %v927_v62  ;;  %v1385_v0 = vpop.f32.mrb[18].mxu1 }
 0x382   : > { %v1262_v1 = vmul.f32 -1.442695, %v1619_v61  ;;  %v1626_v2 = vadd.f32 %v1385_v0, %v1616_v59  ;;  %v930_v3 = vpop.f32.mrb[19].mxu1  ;;  %v1091_v54 = vmax.f32 %v1619_v61, 0.0 }
 0x383   : > { %v1260_v4 = vmul.f32 -1.442695, %v1622_v63  ;;  %v1630_v5 = vadd.f32 %v1616_v59, %v930_v3  ;;  %v1089_v60 = vmax.f32 %v1622_v63, 0.0 }
 0x384   : > { %1422 = vpow2.f32 %v1262_v1  ;;  %v1263_v6 = vmul.f32 -1.442695, %v1626_v2  ;;  %v1092_v3 = vmax.f32 %v1626_v2, 0.0 }
 0x385   : > { %1424 = vpow2.f32 %v1260_v4  ;;  %v1261_v7 = vmul.f32 -1.442695, %v1630_v5 }
 0x386   : > { %1426 = vpow2.f32 %v1263_v6 }
 0x387   : > { %1428 = vpow2.f32 %v1261_v7  ;;  %v1388_v8 = vpop.f32.mrb[20].mxu1  ;;  %v1090_v7 = vmax.f32 %v1630_v5, 0.0 }
 0x388   : > { %v1635_v9 = vadd.f32 %v1388_v8, %v1616_v59  ;;  %v943_v10 = vpop.f32.mrb[21].mxu1 }
 0x389   : > { %v1638_v11 = vadd.f32 %v1616_v59, %v943_v10  ;;  %v1389_v12 = vpop.f32.mrb[22].mxu1 }
 0x38a   : > { %v1266_v13 = vmul.f32 -1.442695, %v1635_v9  ;;  %v1642_v14 = vadd.f32 %v1389_v12, %v1616_v59  ;;  %v946_v15 = vpop.f32.mrb[23].mxu1 }
 0x38b   : > { %v1264_v16 = vmul.f32 -1.442695, %v1638_v11  ;;  %v1646_v17 = vadd.f32 %v1616_v59, %v946_v15 }
 0x38c   : > { %1430 = vpow2.f32 %v1266_v13  ;;  %v1267_v18 = vmul.f32 -1.442695, %v1642_v14 }
 0x38d   : > { %1432 = vpow2.f32 %v1264_v16  ;;  %v1265_v19 = vmul.f32 -1.442695, %v1646_v17 }
 0x38e   : > { %v1423_v20 = vpop.eup %1422  ;;  %1434 = vpow2.f32 %v1267_v18 }
 0x38f   : > { %v1425_v21 = vpop.eup %1424  ;;  %v1043_v22 = vadd.f32 1.0, %v1423_v20  ;;  %1436 = vpow2.f32 %v1265_v19  ;;  %v1392_v23 = vpop.f32.mrb[24].mxu1  ;;  %v1095_v20 = vmax.f32 %v1635_v9, 0.0 }
 0x390   : > { %v1427_v24 = vpop.eup %1426  ;;  %v1041_v26 = vadd.f32 1.0, %v1425_v21  ;;  %v1651_v27 = vadd.f32 %v1392_v23, %v1616_v59  ;;  %v959_v28 = vpop.f32.mrb[25].mxu1  ;;  %v1093_v23 = vmax.f32 %v1638_v11, 0.0 }
 0x391   : > { %v1429_v29 = vpop.eup %1428  ;;  %1438 = vrcp.f32 %v1043_v22  ;;  %v1044_v30 = vadd.f32 1.0, %v1427_v24  ;;  %v1654_v31 = vadd.f32 %v1616_v59, %v959_v28  ;;  %v1393_v32 = vpop.f32.mrb[26].mxu1  ;;  %v1096_v28 = vmax.f32 %v1642_v14, 0.0 }
 0x392   : > { %1440 = vrcp.f32 %v1041_v26  ;;  %v1042_v33 = vadd.f32 1.0, %v1429_v29  ;;  %v1270_v34 = vmul.f32 -1.442695, %v1651_v27  ;;  %v962_v35 = vpop.f32.mrb[27].mxu1  ;;  %v1659_v37 = vadd.f32 %v1393_v32, %v1616_v59 }
 0x393   : > { %1442 = vrcp.f32 %v1044_v30  ;;  %v1268_v36 = vmul.f32 -1.442695, %v1654_v31  ;;  %v1664_v39 = vadd.f32 %v1616_v59, %v962_v35  ;;  %v1094_v30 = vmax.f32 %v1646_v17, 0.0 }
 0x394   : > { %1444 = vrcp.f32 %v1042_v33  ;;  %v1271_v40 = vmul.f32 -1.442695, %v1659_v37 }
 0x395   : > { %1446 = vpow2.f32 %v1270_v34  ;;  %v1269_v42 = vmul.f32 -1.442695, %v1664_v39 }
 0x396   : > { %v1431_v41 = vpop.eup %1430  ;;  %1448 = vpow2.f32 %v1268_v36 }
 0x397   : > { %v1433_v43 = vpop.eup %1432  ;;  %v1047_v44 = vadd.f32 1.0, %v1431_v41  ;;  %1450 = vpow2.f32 %v1271_v40  ;;  %v1396_v45 = vpop.f32.mrb[28].mxu1 }
 0x398   : > { %v1435_v46 = vpop.eup %1434  ;;  %v1045_v47 = vadd.f32 1.0, %v1433_v43  ;;  %1452 = vpow2.f32 %v1269_v42  ;;  %v1671_v48 = vadd.f32 %v1396_v45, %v1616_v59  ;;  %v975_v49 = vpop.f32.mrb[29].mxu1  ;;  %v1099_v42 = vmax.f32 %v1651_v27, 0.0 }
 0x399   : > { %v1437_v50 = vpop.eup %1436  ;;  %1454 = vrcp.f32 %v1047_v44  ;;  %v1048_v51 = vadd.f32 1.0, %v1435_v46  ;;  %v1674_v52 = vadd.f32 %v1616_v59, %v975_v49  ;;  %v1397_v53 = vpop.f32.mrb[30].mxu1  ;;  %v1097_v45 = vmax.f32 %v1654_v31, 0.0 }
 0x39a   : > { %1456 = vrcp.f32 %v1045_v47  ;;  %v1046_v55 = vadd.f32 1.0, %v1437_v50  ;;  %v1274_v56 = vmul.f32 -1.442695, %v1671_v48  ;;  %v978_v57 = vpop.f32.mrb[31].mxu1  ;;  %v1686_v0 = vadd.f32 %v1397_v53, %v1616_v59 }
 0x39b   : > { %v1439_v58 = vpop.eup %1438  ;;  %1458 = vrcp.f32 %v1048_v51  ;;  %v1272_v62 = vmul.f32 -1.442695, %v1674_v52  ;;  %v1692_v4 = vadd.f32 %v1616_v59, %v978_v57  ;;  %v1100_v49 = vmax.f32 %v1659_v37, 0.0 }
 0x39c   : > { %v1441_v1 = vpop.eup %1440  ;;  %v1107_v61 = vsel %vm992_vm1, %v1439_v58, %v1091_v54  ;;  %1460 = vrcp.f32 %v1046_v55  ;;  %v1275_v8 = vmul.f32 -1.442695, %v1686_v0  ;;  %v1098_v51 = vmax.f32 %v1664_v39, 0.0 }
 0x39d   : > { %v1443_v6 = vpop.eup %1442  ;;  %1124 = vst.msk [vmem:[%s1679_s13 + $0x10] sm:$0xff] %vm1121_vm2, %v1107_v61  ;;  %v1105_v63 = vsel %vm992_vm1, %v1441_v1, %v1089_v60  ;;  %1462 = vpow2.f32 %v1274_v56  ;;  %v1273_v59 = vmul.f32 -1.442695, %v1692_v4  ;;  %v1103_v54 = vmax.f32 %v1671_v48, 0.0 }
 0x39e   : > { %v1445_v10 = vpop.eup %1444  ;;  %1122 = vst.msk [vmem:[%s1679_s13] sm:$0xff] %vm1121_vm2, %v1105_v63  ;;  %v1108_v2 = vsel %vm992_vm1, %v1443_v6, %v1092_v3  ;;  %1464 = vpow2.f32 %v1272_v62  ;;  %v1101_v39 = vmax.f32 %v1674_v52, 0.0  ;;  %v1104_v58 = vmax.f32 %v1686_v0, 0.0 }
 0x39f   : > { %v1447_v12 = vpop.eup %1446  ;;  %1125 = vst.msk [vmem:[%s1679_s13 + $0x18] sm:$0xff] %vm1121_vm2, %v1108_v2  ;;  %v1106_v13 = vsel %vm992_vm1, %v1445_v10, %v1090_v7  ;;  %1466 = vpow2.f32 %v1275_v8  ;;  %v1102_v1 = vmax.f32 %v1692_v4, 0.0 }
 0x3a0   : > { %v1449_v5 = vpop.eup %1448  ;;  %1123 = vst.msk [vmem:[%s1679_s13 + $0x8] sm:$0xff] %vm1121_vm2, %v1106_v13  ;;  %v1051_v15 = vadd.f32 1.0, %v1447_v12  ;;  %1468 = vpow2.f32 %v1273_v59 }
 0x3a1   : > { %v1451_v16 = vpop.eup %1450  ;;  %v1049_v18 = vadd.f32 1.0, %v1449_v5 }
 0x3a2   : > { %v1453_v19 = vpop.eup %1452  ;;  %1470 = vrcp.f32 %v1051_v15  ;;  %v1052_v21 = vadd.f32 1.0, %v1451_v16 }
 0x3a3   : > { %v1455_v22 = vpop.eup %1454  ;;  %1472 = vrcp.f32 %v1049_v18  ;;  %v1050_v24 = vadd.f32 1.0, %v1453_v19 }
 0x3a4   : > { %v1457_v25 = vpop.eup %1456  ;;  %v1111_v26 = vsel %vm992_vm1, %v1455_v22, %v1095_v20  ;;  %1474 = vrcp.f32 %v1052_v21 }
 0x3a5   : > { %v1459_v29 = vpop.eup %1458  ;;  %1128 = vst.msk [vmem:[%s1679_s13 + $0x30] sm:$0xff] %vm1121_vm2, %v1111_v26  ;;  %v1109_v9 = vsel %vm992_vm1, %v1457_v25, %v1093_v23  ;;  %1476 = vrcp.f32 %v1050_v24 }
 0x3a6   : > { %v1461_v11 = vpop.eup %1460  ;;  %1126 = vst.msk [vmem:[%s1679_s13 + $0x20] sm:$0xff] %vm1121_vm2, %v1109_v9  ;;  %v1112_v32 = vsel %vm992_vm1, %v1459_v29, %v1096_v28 }
 0x3a7   : > { %v1463_v33 = vpop.eup %1462  ;;  %1129 = vst.msk [vmem:[%s1679_s13 + $0x38] sm:$0xff] %vm1121_vm2, %v1112_v32  ;;  %v1110_v14 = vsel %vm992_vm1, %v1461_v11, %v1094_v30 }
 0x3a8   : > { %v1465_v34 = vpop.eup %1464  ;;  %1127 = vst.msk [vmem:[%s1679_s13 + $0x28] sm:$0xff] %vm1121_vm2, %v1110_v14  ;;  %v1055_v35 = vadd.f32 1.0, %v1463_v33 }
 0x3a9   : > { %v1467_v36 = vpop.eup %1466  ;;  %v1053_v17 = vadd.f32 1.0, %v1465_v34 }
 0x3aa   : > { %v1469_v40 = vpop.eup %1468  ;;  %1478 = vrcp.f32 %v1055_v35  ;;  %v1056_v41 = vadd.f32 1.0, %v1467_v36 }
 0x3ab   : > { %1480 = vrcp.f32 %v1053_v17  ;;  %v1054_v43 = vadd.f32 1.0, %v1469_v40 }
 0x3ac   : > { %v1471_v44 = vpop.eup %1470  ;;  %1482 = vrcp.f32 %v1056_v41 }
 0x3ad   : > { %v1473_v46 = vpop.eup %1472  ;;  %v1115_v47 = vsel %vm992_vm1, %v1471_v44, %v1099_v42  ;;  %1484 = vrcp.f32 %v1054_v43 }
 0x3ae   : > { %v1475_v50 = vpop.eup %1474  ;;  %1132 = vst.msk [vmem:[%s1679_s13 + $0x50] sm:$0xff] %vm1121_vm2, %v1115_v47  ;;  %v1113_v27 = vsel %vm992_vm1, %v1473_v46, %v1097_v45 }
 0x3af   : > { %v1477_v53 = vpop.eup %1476  ;;  %1130 = vst.msk [vmem:[%s1679_s13 + $0x40] sm:$0xff] %vm1121_vm2, %v1113_v27  ;;  %v1116_v31 = vsel %vm992_vm1, %v1475_v50, %v1100_v49 }
 0x3b0   : > { %1133 = vst.msk [vmem:[%s1679_s13 + $0x58] sm:$0xff] %vm1121_vm2, %v1116_v31  ;;  %v1114_v37 = vsel %vm992_vm1, %v1477_v53, %v1098_v51 }
 0x3b1   : > { %1131 = vst.msk [vmem:[%s1679_s13 + $0x48] sm:$0xff] %vm1121_vm2, %v1114_v37 }
 0x3b4   : > { %v1479_v55 = vpop.eup %1478 }
 0x3b5   : > { %v1481_v56 = vpop.eup %1480  ;;  %v1119_v57 = vsel %vm992_vm1, %v1479_v55, %v1103_v54 }
 0x3b6   : > { %v1483_v60 = vpop.eup %1482  ;;  %1136 = vst.msk [vmem:[%s1679_s13 + $0x70] sm:$0xff] %vm1121_vm2, %v1119_v57  ;;  %v1117_v62 = vsel %vm992_vm1, %v1481_v56, %v1101_v39 }
 0x3b7   : > { %v1485_v61 = vpop.eup %1484  ;;  %1134 = vst.msk [vmem:[%s1679_s13 + $0x60] sm:$0xff] %vm1121_vm2, %v1117_v62  ;;  %v1120_v48 = vsel %vm992_vm1, %v1483_v60, %v1104_v58 }
 0x3b8   : > { %1137 = vst.msk [vmem:[%s1679_s13 + $0x78] sm:$0xff] %vm1121_vm2, %v1120_v48  ;;  %v1118_v52 = vsel %vm992_vm1, %v1485_v61, %v1102_v1 }
 0x3b9   : > { %1135 = vst.msk [vmem:[%s1679_s13 + $0x68] sm:$0xff] %vm1121_vm2, %v1118_v52 }
 0x3ba PF: > { %s17_s24 = sadd.s32 1, %s1492_s24  }
 0x3bb   : > { %p14_p4 = scmp.ge.s32.totalorder %s17_s24, 4  }
 0x3bd   :  { %16 = sbr.rel (!%p14_p4) target bundleno = 1 (0x1), region = 80 }

</bundles_post_ra>
